<compile_context>
chip_gen: v7x
topology: tpu7x:2x2x1
jax: 0.10.0
libtpu: 0.0.40
codegen_flags: <defaults>
</compile_context>

<pallas_src>
import jax
import jax.numpy as jnp
from jax.experimental import pallas as pl
from jax.experimental.pallas import tpu as pltpu


def _matmul_kernel(b_ref, x_ref, o_ref, acc_ref):
    """Computes one (tm, tn) output tile, accumulating over the K grid axis."""
    @pl.when(pl.program_id(2) == 0)
    def _():
        acc_ref[...] = jnp.zeros_like(acc_ref)

    acc_ref[...] += jnp.dot(
        b_ref[...], x_ref[...], preferred_element_type=jnp.float32
    )

    @pl.when(pl.program_id(2) == pl.num_programs(2) - 1)
    def _():
        o_ref[...] = acc_ref[...]


def _round_up(v, m):
    return ((v + m - 1) // m) * m


def linear_model_forward(B, x, *, tm=256, tn=256, tk=512):
    """Compute yhat = B @ x with a tiled Pallas TPU matmul kernel.

    B: (L, L) float32
    x: (L, N) float32
    returns: (L, N) float32
    """
    M, K = B.shape
    Kx, N = x.shape
    assert M == K, "B must be square (L, L)"
    assert Kx == K, "x leading dim must match L"

    # Tile-size constraints for f32 blocks:
    #   tm (sublane dim of B/out blocks) -> multiple of 8
    #   tn, tk (lane dims)               -> multiples of 128
    tm = min(tm, _round_up(M, 8))
    tn = min(tn, _round_up(N, 128))
    tk = min(tk, _round_up(K, 128))

    # Pad operands so the grid divides evenly and the output lane dim is dense.
    Mp, Np, Kp = _round_up(M, tm), _round_up(N, tn), _round_up(K, tk)
    Bp = B if (Mp, Kp) == (M, K) else jnp.zeros((Mp, Kp), B.dtype).at[:M, :K].set(B)
    xp = x if (Kp, Np) == (K, N) else jnp.zeros((Kp, Np), x.dtype).at[:K, :N].set(x)

    out = pl.pallas_call(
        _matmul_kernel,
        out_shape=jax.ShapeDtypeStruct((Mp, Np), jnp.float32),
        grid=(Mp // tm, Np // tn, Kp // tk),
        in_specs=[
            pl.BlockSpec((tm, tk), lambda i, j, k: (i, k)),
            pl.BlockSpec((tk, tn), lambda i, j, k: (k, j)),
        ],
        out_specs=pl.BlockSpec((tm, tn), lambda i, j, k: (i, j)),
        scratch_shapes=[pltpu.VMEM((tm, tn), jnp.float32)],
        compiler_params=pltpu.CompilerParams(
            dimension_semantics=("parallel", "parallel", "arbitrary"),
        ),
    )(Bp, xp)

    # Slice away the zero padding (zero-padded K rows/cols contribute nothing).
    return out[:M, :N]


if __name__ == "__main__":
    # Deterministic parameter + input construction (synthetic, no checkpoints).
    L = 32   # model dimension (B is L x L)
    N = 8    # number of columns / samples in x

    key = jax.random.PRNGKey(0)
    k_b, k_x = jax.random.split(key)

    # torch.randn(L, L) equivalent: standard-normal parameter matrix.
    B = jax.random.normal(k_b, (L, L), dtype=jnp.float32)
    x = jax.random.normal(k_x, (L, N), dtype=jnp.float32)

    fwd = jax.jit(linear_model_forward)
    yhat = fwd(B, x)
    jax.block_until_ready(yhat)

    # Verify against plain JAX reference.
    ref = B @ x
    assert yhat.shape == (L, N)
    assert jnp.allclose(yhat, ref, atol=1e-5, rtol=1e-5)

    print("KERNEL_OK")
</pallas_src>

<mosaic_0001>
module attributes {stable_mosaic.version = 11 : i64} {
  func.func @_matmul_kernel(%arg0: i32, %arg1: i32, %arg2: i32, %arg3: memref<32x128xf32, #tpu.memory_space<vmem>>, %arg4: memref<128x128xf32, #tpu.memory_space<vmem>>, %arg5: memref<32x128xf32, #tpu.memory_space<vmem>>, %arg6: memref<32x128xf32, #tpu.memory_space<vmem>>) attributes {dimension_semantics = [#tpu.dimension_semantics<parallel>, #tpu.dimension_semantics<parallel>, #tpu.dimension_semantics<arbitrary>], iteration_bounds = array<i64: 1, 1, 1>, scalar_prefetch = 0 : i64, scratch_operands = 1 : i64, tpu.core_type = #tpu.core_type<tc>, window_params = [{transform_indices = @transform_0, window_bounds = array<i64: 32, 128>}, {transform_indices = @transform_1, window_bounds = array<i64: 128, 128>}, {transform_indices = @transform_2, window_bounds = array<i64: 32, 128>}]} {
    %c0_i32 = arith.constant 0 : i32
    %0 = arith.cmpi eq, %arg2, %c0_i32 : i32
    %1 = arith.extui %0 : i1 to i32
    %c0_i32_0 = arith.constant 0 : i32
    %2 = arith.cmpi ne, %1, %c0_i32_0 : i32
    scf.if %2 {
      %cst_10 = arith.constant 0.000000e+00 : f32
      %12 = vector.broadcast %cst_10 : f32 to vector<32x128xf32>
      %c0_11 = arith.constant 0 : index
      %c0_12 = arith.constant 0 : index
      %13 = vector.load %arg6[%c0_11, %c0_12] : memref<32x128xf32, #tpu.memory_space<vmem>>, vector<32x128xf32>
      tpu.vector_store %arg6[%c0_11, %c0_12], %12 {strides = array<i32>} : memref<32x128xf32, #tpu.memory_space<vmem>>, vector<32x128xf32>,
    } else {
    }
    %c0 = arith.constant 0 : index
    %c0_1 = arith.constant 0 : index
    %3 = vector.load %arg6[%c0, %c0_1] : memref<32x128xf32, #tpu.memory_space<vmem>>, vector<32x128xf32>
    %c0_2 = arith.constant 0 : index
    %c0_3 = arith.constant 0 : index
    %4 = vector.load %arg3[%c0_2, %c0_3] : memref<32x128xf32, #tpu.memory_space<vmem>>, vector<32x128xf32>
    %c0_4 = arith.constant 0 : index
    %c0_5 = arith.constant 0 : index
    %5 = vector.load %arg4[%c0_4, %c0_5] : memref<128x128xf32, #tpu.memory_space<vmem>>, vector<128x128xf32>
    %cst = arith.constant dense<0.000000e+00> : vector<32x128xf32>
    %6 = tpu.matmul %4, %5, %cst {dimension_numbers = #tpu.dot_dimension_numbers<[1], [0], [0], [1], [0, 0, 1, 1], [], []>} : vector<32x128xf32>, vector<128x128xf32>, vector<32x128xf32> -> vector<32x128xf32>
    %7 = arith.addf %3, %6 : vector<32x128xf32>
    %c0_6 = arith.constant 0 : index
    %c0_7 = arith.constant 0 : index
    %8 = vector.load %arg6[%c0_6, %c0_7] : memref<32x128xf32, #tpu.memory_space<vmem>>, vector<32x128xf32>
    tpu.vector_store %arg6[%c0_6, %c0_7], %7 {strides = array<i32>} : memref<32x128xf32, #tpu.memory_space<vmem>>, vector<32x128xf32>,
    %c0_i32_8 = arith.constant 0 : i32
    %9 = arith.cmpi eq, %arg2, %c0_i32_8 : i32
    %10 = arith.extui %9 : i1 to i32
    %c0_i32_9 = arith.constant 0 : i32
    %11 = arith.cmpi ne, %10, %c0_i32_9 : i32
    scf.if %11 {
      %c0_10 = arith.constant 0 : index
      %c0_11 = arith.constant 0 : index
      %12 = vector.load %arg6[%c0_10, %c0_11] : memref<32x128xf32, #tpu.memory_space<vmem>>, vector<32x128xf32>
      %c0_12 = arith.constant 0 : index
      %c0_13 = arith.constant 0 : index
      %13 = vector.load %arg5[%c0_12, %c0_13] : memref<32x128xf32, #tpu.memory_space<vmem>>, vector<32x128xf32>
      tpu.vector_store %arg5[%c0_12, %c0_13], %12 {strides = array<i32>} : memref<32x128xf32, #tpu.memory_space<vmem>>, vector<32x128xf32>,
    } else {
    }
    return
  }
  func.func @transform_0(%arg0: i32, %arg1: i32, %arg2: i32) -> (i32, i32) {
    %c0_i32 = arith.constant 0 : i32
    return %arg0, %arg2 : i32, i32
  }
  func.func @transform_1(%arg0: i32, %arg1: i32, %arg2: i32) -> (i32, i32) {
    %c0_i32 = arith.constant 0 : i32
    return %arg2, %arg1 : i32, i32
  }
  func.func @transform_2(%arg0: i32, %arg1: i32, %arg2: i32) -> (i32, i32) {
    %c0_i32 = arith.constant 0 : i32
    return %arg0, %arg1 : i32, i32
  }
}

</mosaic_0001>

<bundles_post_ra>
// kernel: linear_model_forward.1
= control target key start
LH: loop header
LB: loop body
LE: loop exit
PB: predicated region body
PF: predicated region fallthrough
CT: control target
= control target key end

     0   :  { %s344_s1 = inlined_call_operand.vmem [shape: f32[128,128], index: 1, kind: input, shape index: {}]   ;;  %s345_s0 = inlined_call_operand.vmem [shape: f32[32,128], index: 0, kind: input, shape index: {}]   ;;  %s346_s2 = inlined_call_operand.vmem [shape: f32[32,128], index: 2, kind: output, shape index: {}]  }
   0x1   :  { %v27_v0 = vld [vmem:[%s344_s1] sm:$0xff]  ;;  %v28_v1 = vld [vmem:[%s344_s1 + $0x8] sm:$0xff]  ;;  %v29_v2 = vld [vmem:[%s344_s1 + $0x10] sm:$0xff] }
   0x2   :  { %v209_v3 = vpack.c.bf16 %v28_v1, %v27_v0  ;;  %v30_v4 = vld [vmem:[%s344_s1 + $0x18] sm:$0xff]  ;;  %v31_v6 = vld [vmem:[%s344_s1 + $0x20] sm:$0xff]  ;;  %v32_v7 = vld [vmem:[%s344_s1 + $0x28] sm:$0xff] }
   0x3   :  { %v213_v5 = vpack.c.bf16 %v30_v4, %v29_v2  ;;  %v217_v8 = vpack.c.bf16 %v32_v7, %v31_v6  ;;  %v23_v9 = vld [vmem:[%s345_s0] sm:$0xff]  ;;  %v25_v10 = vld [vmem:[%s345_s0 + $0x10] sm:$0xff]  ;;  %v34_v12 = vld [vmem:[%s344_s1 + $0x38] sm:$0xff] }
   0x4   :  { %210 = vmatprep.subr.bf16.mxu0 %v209_v3  ;;  %241 = vmatprep.subr.bf16.mxu1 %v209_v3  ;;  %v33_v11 = vld [vmem:[%s344_s1 + $0x30] sm:$0xff]  ;;  %v35_v14 = vld [vmem:[%s344_s1 + $0x40] sm:$0xff]  ;;  %v36_v15 = vld [vmem:[%s344_s1 + $0x48] sm:$0xff] }
   0x5   :  { %212 = vmatpush3.bf16.msra.mxu0 %v209_v3  ;;  %249 = vmatpush3.bf16.msra.mxu1 %v209_v3  ;;  %v221_v13 = vpack.c.bf16 %v34_v12, %v33_v11  ;;  %v225_v16 = vpack.c.bf16 %v36_v15, %v35_v14  ;;  %v37_v17 = vld [vmem:[%s344_s1 + $0x50] sm:$0xff]  ;;  %v38_v18 = vld [vmem:[%s344_s1 + $0x58] sm:$0xff]  ;;  %v39_v20 = vld [vmem:[%s344_s1 + $0x60] sm:$0xff] }
   0x6   :  { %214 = vmatprep.subr.bf16.mxu0 %v213_v5  ;;  %242 = vmatprep.subr.bf16.mxu1 %v213_v5  ;;  %v229_v19 = vpack.c.bf16 %v38_v18, %v37_v17  ;;  %v40_v21 = vld [vmem:[%s344_s1 + $0x68] sm:$0xff]  ;;  %v41_v23 = vld [vmem:[%s344_s1 + $0x70] sm:$0xff]  ;;  %v42_v24 = vld [vmem:[%s344_s1 + $0x78] sm:$0xff] }
   0x7   :  { %203 = vmatprep.mubr.f32.mxu0 %v23_v9  ;;  %206 = vmatprep.mubr.f32.mxu1 %v25_v10  ;;  %v233_v22 = vpack.c.bf16 %v40_v21, %v39_v20  ;;  %v237_v25 = vpack.c.bf16 %v42_v24, %v41_v23  ;;  %v24_v26 = vld [vmem:[%s345_s0 + $0x8] sm:$0xff]  ;;  %v26_v27 = vld [vmem:[%s345_s0 + $0x18] sm:$0xff] }
   0x9   :  { %216 = vmatpush3.bf16.msra.mxu0 %v213_v5  ;;  %250 = vmatpush3.bf16.msra.mxu1 %v213_v5 }
   0xa   :  { %218 = vmatprep.subr.bf16.mxu0 %v217_v8  ;;  %243 = vmatprep.subr.bf16.mxu1 %v217_v8 }
   0xd   :  { %220 = vmatpush3.bf16.msra.mxu0 %v217_v8  ;;  %251 = vmatpush3.bf16.msra.mxu1 %v217_v8 }
   0xe   :  { %222 = vmatprep.subr.bf16.mxu0 %v221_v13  ;;  %244 = vmatprep.subr.bf16.mxu1 %v221_v13 }
  0x11   :  { %224 = vmatpush3.bf16.msra.mxu0 %v221_v13  ;;  %252 = vmatpush3.bf16.msra.mxu1 %v221_v13 }
  0x12   :  { %226 = vmatprep.subr.bf16.mxu0 %v225_v16  ;;  %245 = vmatprep.subr.bf16.mxu1 %v225_v16 }
  0x15   :  { %228 = vmatpush3.bf16.msra.mxu0 %v225_v16  ;;  %253 = vmatpush3.bf16.msra.mxu1 %v225_v16 }
  0x16   :  { %230 = vmatprep.subr.bf16.mxu0 %v229_v19  ;;  %246 = vmatprep.subr.bf16.mxu1 %v229_v19 }
  0x19   :  { %232 = vmatpush3.bf16.msra.mxu0 %v229_v19  ;;  %254 = vmatpush3.bf16.msra.mxu1 %v229_v19 }
  0x1a   :  { %234 = vmatprep.subr.bf16.mxu0 %v233_v22  ;;  %247 = vmatprep.subr.bf16.mxu1 %v233_v22 }
  0x1d   :  { %236 = vmatpush3.bf16.msra.mxu0 %v233_v22  ;;  %255 = vmatpush3.bf16.msra.mxu1 %v233_v22 }
  0x1e   :  { %238 = vmatprep.subr.bf16.mxu0 %v237_v25  ;;  %248 = vmatprep.subr.bf16.mxu1 %v237_v25 }
  0x21   :  { %240 = vmatpush3.bf16.msra.mxu0 %v237_v25  ;;  %256 = vmatpush3.bf16.msra.mxu1 %v237_v25 }
  0x24   :  { %204 = vmatmul.mubr.f32.vlgmr.msra.gmra.mrb[0].mxu0 %v24_v26  ;;  %207 = vmatmul.mubr.f32.vlgmr.msra.gmra.mrb[0].mxu1 %v26_v27 }
  0xf7   :  { %v205_v28 = vpop.f32.mrb[0].mxu0  ;;  %v208_v29 = vpop.f32.mrb[0].mxu1 }
  0xf8   :  { %144 = vst [vmem:[%s346_s2 + $0x8] sm:$0xff] %v205_v28  ;;  %146 = vst [vmem:[%s346_s2 + $0x18] sm:$0xff] %v208_v29  ;;  %v109_v30 = vpop.f32.mrb[1].mxu0  ;;  %v119_v31 = vpop.f32.mrb[1].mxu1 }
  0xf9   :  { %143 = vst [vmem:[%s346_s2] sm:$0xff] %v109_v30  ;;  %145 = vst [vmem:[%s346_s2 + $0x10] sm:$0xff] %v119_v31 }

</bundles_post_ra>
